<compile_context>
chip_gen: v7x
topology: tpu7x:2x2x1
jax: 0.10.0
libtpu: 0.0.40
codegen_flags: <defaults>
</compile_context>

<pallas_src>
import functools
from types import SimpleNamespace

import jax
import jax.numpy as jnp
import numpy as np
from jax.experimental import pallas as pl
from jax.experimental.pallas import tpu as pltpu

_LANE = 128                       # lane tile
_ACC_ROWS = 8                     # sublane tile / accumulator rows
_TARGET_BLOCK_BYTES = 512 * 1024  # per input buffer (x2 for double-buffering)


def _round_up(x, m):
    return ((x + m - 1) // m) * m


def _overflow_kernel(x_ref, acc_ref, *, block_rows, rows_total,
                     need_mask, edge_s, edge_k, edge_row0):
    """Accumulate sum(|x - clamp(x,-1,1)|) for this shard into an (8,128) tile."""
    s = pl.program_id(0)
    k = pl.program_id(1)

    @pl.when(k == 0)
    def _():
        acc_ref[...] = jnp.zeros_like(acc_ref)

    x = x_ref[...].astype(jnp.float32)       # HBM reads stay native dtype
    y = jnp.abs(x - jnp.clip(x, -1.0, 1.0))  # (block_rows, 128)

    def _fold(v):
        # Fold sublane groups down to one (8,128) tile with VPU adds.
        return v.reshape(block_rows // _ACC_ROWS, _ACC_ROWS, _LANE).sum(axis=0)

    if not need_mask:
        acc_ref[...] += _fold(y)
    else:
        # Only the single, statically-known last global block is ragged; the
        # steady-state path stays mask-free.
        is_edge = jnp.logical_and(s == edge_s, k == edge_k)

        @pl.when(jnp.logical_not(is_edge))
        def _():
            acc_ref[...] += _fold(y)

        @pl.when(is_edge)
        def _():
            row_idx = jax.lax.broadcasted_iota(
                jnp.int32, (block_rows, _LANE), 0) + edge_row0
            acc_ref[...] += _fold(jnp.where(row_idx < rows_total, y, 0.0))


def overflow_loss_pallas(nca_state):
    """mean(|x - clamp(x,-1,1)|) via a tiled, megacore-friendly Pallas reduction."""
    x = jnp.asarray(nca_state)
    n_elems = x.size
    if n_elems == 0:
        return jnp.float32(0.0)

    flat = x.reshape(-1)                       # bitcast view for contiguous input
    # Lane pad only (<=127 elems).  Zeros contribute nothing (clamp(0) == 0);
    # typical NCA shapes (C * H * W multiple of 128) take the no-pad path.
    pad = (-flat.shape[0]) % _LANE
    if pad:
        flat = jnp.pad(flat, (0, pad))
    x2d = flat.reshape(-1, _LANE)
    rows = x2d.shape[0]

    itemsize = jnp.dtype(x2d.dtype).itemsize
    # ~512 KiB per input buffer, in sublane multiples (f32 -> 1024 rows, bf16 -> 2048).
    max_rows = max(_ACC_ROWS,
                   (_TARGET_BLOCK_BYTES // (itemsize * _LANE)) // _ACC_ROWS * _ACC_ROWS)
    block_rows = min(max_rows, _round_up(rows, _ACC_ROWS))
    num_blocks = pl.cdiv(rows, block_rows)
    # 2-way shard for v7x megacore when it divides evenly; otherwise single shard.
    num_shards = 2 if (num_blocks >= 2 and num_blocks % 2 == 0) else 1
    bps = num_blocks // num_shards             # blocks per shard
    need_mask = num_blocks * block_rows > rows

    kernel = functools.partial(
        _overflow_kernel,
        block_rows=block_rows,
        rows_total=rows,
        need_mask=need_mask,
        edge_s=num_shards - 1,
        edge_k=bps - 1,
        edge_row0=(num_blocks - 1) * block_rows,
    )

    partials = pl.pallas_call(
        kernel,
        out_shape=jax.ShapeDtypeStruct((num_shards, _ACC_ROWS, _LANE), jnp.float32),
        grid_spec=pltpu.PrefetchScalarGridSpec(
            num_scalar_prefetch=0,
            grid=(num_shards, bps),
            in_specs=[pl.BlockSpec((block_rows, _LANE),
                                   lambda s, k, _bps=bps: (s * _bps + k, 0))],
            out_specs=pl.BlockSpec((None, _ACC_ROWS, _LANE),
                                   lambda s, k: (s, 0, 0)),
        ),
        compiler_params=pltpu.CompilerParams(
            dimension_semantics=("parallel", "arbitrary"),
            vmem_limit_bytes=32 << 20),
        cost_estimate=pl.CostEstimate(
            flops=5 * rows * _LANE,
            transcendentals=0,
            bytes_accessed=rows * _LANE * itemsize
            + num_shards * _ACC_ROWS * _LANE * 4),
    )(x2d)

    # Tiny final cross-lane reduce of (num_shards, 8, 128) partials in plain JAX.
    return jnp.sum(partials) / jnp.float32(n_elems)


class Loss:
    """JAX/Pallas port of the PyTorch Loss module (forward pass only)."""

    def __init__(self, args):
        self.args = args
        self.appearance_loss_weight = getattr(args, 'appearance_loss_weight', 0.0)
        self.vector_field_motion_loss_weight = getattr(args, 'vector_field_motion_loss_weight', 0.0)
        self.video_motion_loss_weight = getattr(args, 'video_motion_loss_weight', 0.0)
        self.overflow_loss_weight = getattr(args, 'overflow_loss_weight', 0.0)
        self._create_losses()
        self.weight_dict = self.get_manual_weight()

    def get_overflow_loss(self, input_dict, return_summary=True):
        nca_state = input_dict['nca_state']
        return overflow_loss_pallas(nca_state), None, None

    def _create_losses(self):
        self.loss_mapper = {}
        self.loss_weights = {}
        if self.overflow_loss_weight != 0:
            self.loss_mapper['overflow'] = self.get_overflow_loss
            self.loss_weights['overflow'] = self.overflow_loss_weight
        # TODO(synk): vector_field_motion / appearance / video_motion losses —
        # reference classes not present in the provided source; not translatable.

    def set_loss_weight(self, appearance_loss_log=None, loss_name='video_motion',
                        loss_num=10.0, medium_mt=None):
        if loss_name == 'video_motion':
            img_size = self.args.img_size[0]
            img_name = self.args.target_dynamics_path.split('/')[-1].split('.')[0]
            nca_config = f'{self.args.nca_c_in}-{self.args.nca_fc_dim}'
            motion_loss_weight_reset = loss_num
            if medium_mt is not None:
                if img_size == 256:
                    motion_loss_weight_reset = min(10.0, max(medium_mt * 6.04 - 2.17, 2.0))
                elif img_size == 128:
                    motion_loss_weight_reset = min(10.0, max(medium_mt * 5.82 - 1.05, 2.0))
                if img_name in self.weight_dict[nca_config]:
                    motion_loss_weight_reset = self.weight_dict[nca_config][img_name]
            self.loss_weights['video_motion'] = motion_loss_weight_reset
        if loss_name == 'vector_field_motion':
            self.loss_weights['vector_field_motion'] = float(np.median(appearance_loss_log)) / 50.0

    def forward(self, input_dict, return_log=True, return_summary=True):
        loss = jnp.float32(0.0)
        loss_log_dict = {}
        summary_dict = {}
        for loss_name in self.loss_mapper:
            l, loss_log, sub_summary = self.loss_mapper[loss_name](
                input_dict, return_summary=return_summary)
            if return_log and loss_log is not None:
                for sub_loss_name in loss_log:
                    loss_log_dict[f'{loss_name}-{sub_loss_name}'] = float(loss_log[sub_loss_name])
            if sub_summary is not None:
                for summary_name in sub_summary:
                    summary_dict[f'{loss_name}-{summary_name}'] = sub_summary[summary_name]
            l = l * self.loss_weights[loss_name]
            if return_log:
                # Host sync (matches PyTorch .item()); gated so training steps that
                # don't log avoid the device->host stall.
                loss_log_dict[loss_name] = float(l)
            loss = loss + l
        output = [loss]
        if return_log:
            output.append(loss_log_dict)
        if return_summary:
            output.append(summary_dict)
        else:
            output.append(None)
        if len(output) == 1:
            return output[0]
        return output

    __call__ = forward

    @staticmethod
    def get_manual_weight():
        return {'12-96': {'ants': 0.2, 'fur': 1.0, 'sea_2': 4.0, 'flames': 3.0,
                          'sky_clouds_1': 0.25, 'smoke_2': 0.1, 'smoke_3': 0.5,
                          'sea_3': 2.0, 'calm_water_4': 1.0, 'calm_water_2': 1.0},
                '16-128': {'ants': 0.2, 'fur': 1.0, 'sea_2': 4.0, 'flames': 2.0,
                           'sky_clouds_1': 0.25, 'smoke_2': 0.1, 'smoke_3': 1.0,
                           'sea_3': 2.0, 'calm_water_4': 1.0, 'calm_water_2': 1.0}}


def _ref_overflow(x):
    x32 = x.astype(jnp.float32)
    return jnp.mean(jnp.abs(x32 - jnp.clip(x32, -1.0, 1.0)))


if __name__ == "__main__":
    args = SimpleNamespace(
        overflow_loss_weight=0.5,
        appearance_loss_weight=0.0,
        vector_field_motion_loss_weight=0.0,
        video_motion_loss_weight=0.0,
        img_size=(16, 16),
        nca_c_in=12,
        nca_fc_dim=96,
        target_dynamics_path='data/fur.mp4',
    )

    key = jax.random.PRNGKey(0)
    k1, k2, k3, k4 = jax.random.split(key, 4)

    # Test 1: small NCHW f32 state through the full Loss module (single block).
    nca_state = 2.5 * jax.random.normal(k1, (2, 12, 16, 16), dtype=jnp.float32)
    loss_mod = Loss(args)
    total_loss, loss_log, summary = loss_mod({'nca_state': nca_state})
    total_loss = jax.block_until_ready(total_loss)
    ref = args.overflow_loss_weight * _ref_overflow(nca_state)
    assert jnp.allclose(total_loss, ref, rtol=1e-5, atol=1e-6), (total_loss, ref)

    # Test 2: bf16 state — exercises native-dtype HBM reads with in-kernel cast.
    x_bf16 = (2.5 * jax.random.normal(k2, (2, 33, 32, 64), dtype=jnp.float32)
              ).astype(jnp.bfloat16)
    loss2 = jax.block_until_ready(overflow_loss_pallas(x_bf16))
    ref2 = _ref_overflow(x_bf16)
    assert jnp.allclose(loss2, ref2, rtol=2e-5, atol=1e-6), (loss2, ref2)

    # Test 3: awkward shape (size not a multiple of 128) — lane pad + edge mask.
    x_odd = 2.5 * jax.random.normal(k3, (3, 5, 7, 11), dtype=jnp.float32)
    loss3 = jax.block_until_ready(overflow_loss_pallas(x_odd))
    ref3 = _ref_overflow(x_odd)
    assert jnp.allclose(loss3, ref3, rtol=1e-5, atol=1e-6), (loss3, ref3)

    # Test 4: ragged multi-block f32 — exercises 2-shard parallel axis + edge mask.
    x_big = 2.5 * jax.random.normal(k4, (261120,), dtype=jnp.float32)
    loss4 = jax.block_until_ready(overflow_loss_pallas(x_big))
    ref4 = _ref_overflow(x_big)
    assert jnp.allclose(loss4, ref4, rtol=1e-5, atol=1e-6), (loss4, ref4)

    print("KERNEL_OK")
</pallas_src>

<mosaic_0001>
module attributes {stable_mosaic.version = 11 : i64} {
  func.func @_overflow_kernel(%arg0: i32, %arg1: i32, %arg2: memref<48x128xf32, #tpu.memory_space<vmem>>, %arg3: memref<1x8x128xf32, #tpu.memory_space<vmem>>) attributes {dimension_semantics = [#tpu.dimension_semantics<parallel>, #tpu.dimension_semantics<arbitrary>], iteration_bounds = array<i64: 1, 1>, scalar_prefetch = 0 : i64, scratch_operands = 0 : i64, tpu.core_type = #tpu.core_type<tc>, window_params = [{transform_indices = @transform_0, window_bounds = array<i64: 48, 128>}, {transform_indices = @transform_1, window_bounds = array<i64: 1, 8, 128>}]} {
    %c0_i32 = arith.constant 0 : i32
    %0 = arith.cmpi eq, %arg1, %c0_i32 : i32
    %1 = arith.extui %0 : i1 to i32
    %c0_i32_0 = arith.constant 0 : i32
    %2 = arith.cmpi ne, %1, %c0_i32_0 : i32
    scf.if %2 {
      %cst_10 = arith.constant 0.000000e+00 : f32
      %18 = vector.broadcast %cst_10 : f32 to vector<8x128xf32>
      %c0_11 = arith.constant 0 : index
      %c0_12 = arith.constant 0 : index
      %c0_13 = arith.constant 0 : index
      %19 = vector.load %arg3[%c0_11, %c0_12, %c0_13] : memref<1x8x128xf32, #tpu.memory_space<vmem>>, vector<1x8x128xf32>
      %20 = vector.shape_cast %19 : vector<1x8x128xf32> to vector<8x128xf32>
      %21 = vector.shape_cast %18 : vector<8x128xf32> to vector<1x8x128xf32>
      tpu.vector_store %arg3[%c0_11, %c0_12, %c0_13], %21 {strides = array<i32>} : memref<1x8x128xf32, #tpu.memory_space<vmem>>, vector<1x8x128xf32>,
    } else {
    }
    %c0 = arith.constant 0 : index
    %c0_1 = arith.constant 0 : index
    %3 = vector.load %arg2[%c0, %c0_1] : memref<48x128xf32, #tpu.memory_space<vmem>>, vector<48x128xf32>
    %cst = arith.constant -1.000000e+00 : f32
    %cst_2 = arith.constant 1.000000e+00 : f32
    %4 = vector.broadcast %cst : f32 to vector<48x128xf32>
    %5 = arith.maximumf %4, %3 : vector<48x128xf32>
    %6 = vector.broadcast %cst_2 : f32 to vector<48x128xf32>
    %7 = arith.minimumf %6, %5 : vector<48x128xf32>
    %8 = arith.subf %3, %7 : vector<48x128xf32>
    %9 = math.absf %8 : vector<48x128xf32>
    %c0_3 = arith.constant 0 : index
    %c0_4 = arith.constant 0 : index
    %c0_5 = arith.constant 0 : index
    %10 = vector.load %arg3[%c0_3, %c0_4, %c0_5] : memref<1x8x128xf32, #tpu.memory_space<vmem>>, vector<1x8x128xf32>
    %11 = vector.shape_cast %10 : vector<1x8x128xf32> to vector<8x128xf32>
    %12 = vector.shape_cast %9 : vector<48x128xf32> to vector<6x8x128xf32>
    %cst_6 = arith.constant dense<0.000000e+00> : vector<8x128xf32>
    %13 = vector.multi_reduction <add>, %12, %cst_6 [0] : vector<6x8x128xf32> to vector<8x128xf32>
    %14 = arith.addf %11, %13 : vector<8x128xf32>
    %c0_7 = arith.constant 0 : index
    %c0_8 = arith.constant 0 : index
    %c0_9 = arith.constant 0 : index
    %15 = vector.load %arg3[%c0_7, %c0_8, %c0_9] : memref<1x8x128xf32, #tpu.memory_space<vmem>>, vector<1x8x128xf32>
    %16 = vector.shape_cast %15 : vector<1x8x128xf32> to vector<8x128xf32>
    %17 = vector.shape_cast %14 : vector<8x128xf32> to vector<1x8x128xf32>
    tpu.vector_store %arg3[%c0_7, %c0_8, %c0_9], %17 {strides = array<i32>} : memref<1x8x128xf32, #tpu.memory_space<vmem>>, vector<1x8x128xf32>,
    return
  }
  func.func @transform_0(%arg0: i32, %arg1: i32) -> (i32, i32) {
    %c1_i32 = arith.constant 1 : i32
    %0 = arith.muli %arg0, %c1_i32 : i32
    %1 = arith.addi %0, %arg1 : i32
    %c0_i32 = arith.constant 0 : i32
    %c0_i32_0 = arith.constant 0 : i32
    return %1, %c0_i32 : i32, i32
  }
  func.func @transform_1(%arg0: i32, %arg1: i32) -> (i32, i32, i32) {
    %c0_i32 = arith.constant 0 : i32
    %c0_i32_0 = arith.constant 0 : i32
    %c0_i32_1 = arith.constant 0 : i32
    return %arg0, %c0_i32, %c0_i32_0 : i32, i32, i32
  }
}

</mosaic_0001>

<bundles_post_ra>
// kernel: tpu_custom_call.1
= control target key start
LH: loop header
LB: loop body
LE: loop exit
PB: predicated region body
PF: predicated region fallthrough
CT: control target
= control target key end

     0   :  { %6 = vsyncpa [#allocation3], 0  ;;  %s184_s0 = inlined_call_operand.hbm [shape: f32[48,128], index: 0, kind: input, shape index: {}]   ;;  %s185_s1 = inlined_call_operand.hbm [shape: f32[1,8,128], index: 1, kind: output, shape index: {}]  }
   0x1   :  { %7 = vsyncpa [#allocation4], 0  ;;  %s146_s6 = smov [#allocation2]   ;;  %s98_s10 = scalar_lea.hbm %s184_s0, 768 }
   0x2   :  { %s17_s7 = sshll.u32 %s146_s6, 4  ;;  %p99_p0 = scmp.ne.s32.totalorder %s184_s0, %s98_s10  ;;  %s18_s7 = int_to_ptr.vmem [resolvable:$true] %s17_s7 }
   0x3   :  { %p102_p1 = scmp.lt.u32.totalorder %s98_s10, %s184_s0 }
   0x5   :  { %p104_p2 = pnand %p102_p1, %p99_p0 }
   0x7   :  { %107 = shalt.err (!%p104_p2)
}
   0x8   :  { %s108_s15 = scalar_lea.vmem %s18_s7, 768  ;;  %p113_p4 = scmp.lt.s32.totalorder %s18_s7, %s18_s7 }
   0x9   :  { %p109_p3 = scmp.ne.s32.totalorder %s18_s7, %s108_s15  ;;  %p114_p5 = scmp.lt.s32.totalorder %s108_s15, %s108_s15 }
   0xb   :  { %p115_p6 = por %p114_p5, %p113_p4 }
   0xd   :  { %p116_p7 = pnand %p115_p6, %p109_p3 }
   0xf   :  { %119 = shalt.err (!%p116_p7)
}
  0x10   :  { %s147_s16 = smov 128   ;;  %s148_s17 = smov 8  }
  0x11   :  { %23 = dma.hbm_to_vmem [thread:$0]  %s184_s0, 768, %s18_s7, [#allocation3], %s147_s16, %s147_s16, %s148_s17  }
  0x12   :  { %142 = dma.done.wait [#allocation3], 768  }
  0x13   :  { %143 = vsyncadd [#allocation3], 4294966528  ;;  %v34_v0 = vld [vmem:[#allocation2] sm:$0xff]  ;;  %v35_v1 = vld [vmem:[#allocation2 + $0x8] sm:$0xff]  ;;  %s149_s0 = smov [#allocation5]  }
  0x14   :  { %v36_v2 = vld [vmem:[#allocation2 + $0x10] sm:$0xff]  ;;  %v37_v3 = vld [vmem:[#allocation2 + $0x18] sm:$0xff]  ;;  %v38_v4 = vld [vmem:[#allocation2 + $0x20] sm:$0xff]  ;;  %v87_v6 = vclamps-f32 %v34_v0, 1.0  ;;  %v88_v7 = vclamps-f32 %v35_v1, 1.0  ;;  %s78_s20 = sshll.u32 %s149_s0, 4  ;;  %s79_s20 = int_to_ptr.vmem [resolvable:$true] %s78_s20 }
  0x15   :  { %v39_v5 = vld [vmem:[#allocation2 + $0x28] sm:$0xff]  ;;  %v89_v8 = vclamps-f32 %v36_v2, 1.0  ;;  %v90_v9 = vclamps-f32 %v37_v3, 1.0  ;;  %v91_v10 = vclamps-f32 %v38_v4, 1.0  ;;  %s120_s21 = scalar_lea.vmem %s79_s20, 128  ;;  %p125_p9 = scmp.lt.s32.totalorder %s79_s20, %s79_s20 }
  0x16   :  { %v92_v11 = vclamps-f32 %v39_v5, 1.0  ;;  %v52_v12 = vsub.f32 %v34_v0, %v87_v6  ;;  %v53_v13 = vsub.f32 %v35_v1, %v88_v7  ;;  %p121_p8 = scmp.ne.s32.totalorder %s79_s20, %s120_s21  ;;  %p126_p10 = scmp.lt.s32.totalorder %s120_s21, %s120_s21 }
  0x17   :  { %v54_v14 = vsub.f32 %v36_v2, %v89_v8  ;;  %v55_v15 = vsub.f32 %v37_v3, %v90_v9  ;;  %v56_v16 = vsub.f32 %v38_v4, %v91_v10 }
  0x18   :  { %v58_v17 = vand.u32 2147483647, %v52_v12  ;;  %v59_v18 = vand.u32 2147483647, %v53_v13  ;;  %v57_v20 = vsub.f32 %v39_v5, %v92_v11  ;;  %p127_p11 = por %p126_p10, %p125_p9 }
  0x19   :  { %v60_v19 = vand.u32 2147483647, %v54_v14  ;;  %v61_v21 = vand.u32 2147483647, %v55_v15  ;;  %v62_v23 = vand.u32 2147483647, %v56_v16 }
  0x1a   :  { %v65_v22 = vadd.f32 %v59_v18, %v58_v17  ;;  %v63_v25 = vand.u32 2147483647, %v57_v20  ;;  %p128_p12 = pnand %p127_p11, %p121_p8 }
  0x1c   :  { %v66_v24 = vadd.f32 %v65_v22, %v60_v19 }
  0x1e   :  { %v67_v26 = vadd.f32 %v66_v24, %v61_v21 }
  0x20   :  { %v68_v27 = vadd.f32 %v67_v26, %v62_v23 }
  0x22   :  { %v69_v28 = vadd.f32 %v68_v27, %v63_v25 }
  0x24   :  { %71 = vst [vmem:[#allocation5] sm:$0xff] %v69_v28 }
  0x25   :  { %131 = shalt.err (!%p128_p12)
}
  0x26   :  { %s132_s24 = scalar_lea.hbm %s185_s1, 128 }
  0x27   :  { %p133_p13 = scmp.ne.s32.totalorder %s185_s1, %s132_s24  ;;  %p136_p0 = scmp.lt.u32.totalorder %s132_s24, %s185_s1 }
  0x29   :  { %p138_p1 = pnand %p136_p0, %p133_p13 }
  0x2b   :  { %141 = shalt.err (!%p138_p1)
}
  0x2c   :  { %81 = dma.vmem_to_hbm [thread:$0]  %s79_s20, 128, %s185_s1, [#allocation4]  }
  0x2d   :  { %144 = dma.done.wait [#allocation4], 128  }
  0x2e   :  { %145 = vsyncadd [#allocation4], 4294967168 }
  0x2f   :  { %85 = vsyncpa [#allocation3], 1 }
  0x30   :  { %86 = vsyncpa [#allocation4], 1 }

</bundles_post_ra>
